<compile_context>
chip_gen: v6e
topology: v6e:2x2x1
jax: 0.10.0
libtpu: 0.0.40
codegen_flags: <defaults>
</compile_context>

<pallas_src>
import functools
import math

import jax
import jax.numpy as jnp
from jax.experimental import pallas as pl
from jax.experimental.pallas import tpu as pltpu

NEG_SLOPE = 0.2          # GATConv default negative_slope
MASK_VALUE = -1e30       # additive mask for non-edges


def _round_up(v, m):
    return ((v + m - 1) // m) * m


# -----------------------------------------------------------------------------
# Kernel 1: fused projection (one lane-dense matmul per row tile)
#   h_ext[:, :F] = x @ W,   h_ext[:, F] = x @ (W @ att_dst)   (a_dst fused in)
#   a_src_t[0, r] = <x_r, W @ att_src>   emitted pre-transposed as [1, TM]
# -----------------------------------------------------------------------------
def _proj_kernel(x_ref, wext_ref, wsrc_ref, hext_ref, asrct_ref):
    x = x_ref[...]                                                    # [TM, Fin]
    h_ext = jnp.dot(x, wext_ref[...], preferred_element_type=jnp.float32)
    hext_ref[...] = h_ext.astype(hext_ref.dtype)
    # a_src produced directly in lane (transposed) layout so the aggregation kernel
    # never needs an XLU transpose; one small MXU push per row tile.
    asrct_ref[...] = jax.lax.dot_general(
        wsrc_ref[...], x, (((1,), (1,)), ((), ())),
        preferred_element_type=jnp.float32)                           # [1, TM]


# -----------------------------------------------------------------------------
# Kernel 2: masked-softmax aggregation, online softmax over adjacency column tiles
# -----------------------------------------------------------------------------
def _gat_agg_kernel(hrow_ref, asrc_ref, hcol_ref, adj_ref, bias_ref, out_ref,
                    m_ref, l_ref, acc_ref, *, a_dst_col):
    j = pl.program_id(1)

    @pl.when(j == 0)
    def _init():
        m_ref[...] = jnp.full_like(m_ref, -jnp.inf)
        l_ref[...] = jnp.zeros_like(l_ref)
        acc_ref[...] = jnp.zeros_like(acc_ref)

    a_dst = hrow_ref[:, a_dst_col:a_dst_col + 1].astype(jnp.float32)  # [TM, 1]
    a_src = asrc_ref[...]                                             # [1, TN]
    e = a_dst + a_src                                                 # [TM, TN]
    e = jnp.maximum(e, NEG_SLOPE * e)                                 # LeakyReLU(0.2)
    mask = adj_ref[...].astype(jnp.float32) > 0.0                     # int8 adjacency
    e = jnp.where(mask, e, MASK_VALUE)

    m_prev = m_ref[...]
    m_new = jnp.maximum(m_prev, jnp.max(e, axis=-1, keepdims=True))
    corr = jnp.exp(m_prev - m_new)
    # No explicit re-masking of p: masked logits are -1e30, so exp underflows to 0
    # whenever a live logit has been seen; fully-masked (row, tile) blocks contribute
    # transiently but are zeroed by `corr` once the self-loop tile arrives.
    p = jnp.exp(e - m_new)
    l_ref[...] = corr * l_ref[...] + jnp.sum(p, axis=-1, keepdims=True)
    acc_ref[...] = corr * acc_ref[...] + jnp.dot(
        p.astype(hcol_ref.dtype), hcol_ref[...],
        preferred_element_type=jnp.float32)
    m_ref[...] = m_new

    @pl.when(j == pl.num_programs(1) - 1)
    def _finalize():
        inv_l = pl.reciprocal(l_ref[...], approx=True)   # deferred normalization
        out_ref[...] = (acc_ref[...] * inv_l + bias_ref[...]).astype(out_ref.dtype)


# -----------------------------------------------------------------------------
# Wrapper
# -----------------------------------------------------------------------------
def gat_feature_extractor(x, edge_index, params, *,
                          row_tile=256, col_tile=512,
                          mxu_dtype=jnp.bfloat16):
    """x: [N, F] f32, edge_index: [2, E] int32 (row 0 = src, row 1 = dst)."""
    N, F = x.shape
    w, att_src, att_dst, bias = params
    assert row_tile % 8 == 0 and col_tile % 128 == 0

    f_in = _round_up(F, 128)         # lane-dense input feature width
    f_ext = _round_up(F + 1, 128)    # W columns + fused a_dst column
    n_unit = (row_tile * col_tile) // math.gcd(row_tile, col_tile)
    n_pad = _round_up(N, n_unit)
    n_row = n_pad // row_tile
    n_col = n_pad // col_tile
    esize = jnp.dtype(mxu_dtype).itemsize

    # ---- glue (pure JAX): pad to tile-dense shapes, fold att_dst into W_ext ----
    w32 = w.astype(jnp.float32)
    x_p = jnp.zeros((n_pad, f_in), mxu_dtype).at[:N, :F].set(x.astype(mxu_dtype))
    w_ext = jnp.zeros((f_in, f_ext), jnp.float32)
    w_ext = w_ext.at[:F, :F].set(w32)
    w_ext = w_ext.at[:F, F].set(w32 @ att_dst.astype(jnp.float32))
    w_ext = w_ext.astype(mxu_dtype)
    w_src = jnp.zeros((1, f_in), jnp.float32).at[0, :F].set(
        w32 @ att_src.astype(jnp.float32)).astype(mxu_dtype)
    bias_p = jnp.zeros((1, f_ext), jnp.float32).at[0, :F].set(bias.astype(jnp.float32))

    # Densify the graph as int8: adj[i, j] = 1 iff edge j -> i. Self loops on the full
    # padded diagonal keep every softmax row non-empty (padded rows included).
    # TODO(synk): 0/1 adjacency collapses duplicate (multigraph) edges into one term.
    src, dst = edge_index[0], edge_index[1]
    adj = jnp.zeros((n_pad, n_pad), jnp.int8).at[dst, src].set(1)
    diag = jnp.arange(n_pad)
    adj = adj.at[diag, diag].set(1)

    # ---- kernel 1: fused projection -----------------------------------------
    h_ext, a_src_t = pl.pallas_call(
        _proj_kernel,
        grid=(n_row,),
        in_specs=[
            pl.BlockSpec((row_tile, f_in), lambda i: (i, 0)),
            pl.BlockSpec((f_in, f_ext), lambda i: (0, 0)),
            pl.BlockSpec((1, f_in), lambda i: (0, 0)),
        ],
        out_specs=[
            pl.BlockSpec((row_tile, f_ext), lambda i: (i, 0)),
            pl.BlockSpec((1, row_tile), lambda i: (0, i)),
        ],
        out_shape=[
            jax.ShapeDtypeStruct((n_pad, f_ext), mxu_dtype),
            jax.ShapeDtypeStruct((1, n_pad), jnp.float32),
        ],
        compiler_params=pltpu.CompilerParams(
            dimension_semantics=("parallel",),
            vmem_limit_bytes=32 * 1024 * 1024),
        cost_estimate=pl.CostEstimate(
            flops=int(2 * n_pad * f_in * (f_ext + 1)),
            transcendentals=0,
            bytes_accessed=int(n_pad * f_in * esize + f_in * f_ext * esize
                               + n_pad * f_ext * esize + n_pad * 4)),
    )(x_p, w_ext, w_src)

    # ---- kernel 2: tiled masked softmax + aggregation ------------------------
    agg_kernel = functools.partial(_gat_agg_kernel, a_dst_col=F)
    out_p = pl.pallas_call(
        agg_kernel,
        grid=(n_row, n_col),
        in_specs=[
            pl.BlockSpec((row_tile, f_ext), lambda i, j: (i, 0)),     # h_ext rows (a_dst)
            pl.BlockSpec((1, col_tile), lambda i, j: (0, j)),         # a_src (transposed)
            pl.BlockSpec((col_tile, f_ext), lambda i, j: (j, 0)),     # h_ext cols (values)
            pl.BlockSpec((row_tile, col_tile), lambda i, j: (i, j)),  # int8 adjacency tile
            pl.BlockSpec((1, f_ext), lambda i, j: (0, 0)),            # bias
        ],
        out_specs=pl.BlockSpec((row_tile, f_ext), lambda i, j: (i, 0)),
        out_shape=jax.ShapeDtypeStruct((n_pad, f_ext), jnp.float32),
        scratch_shapes=[
            pltpu.VMEM((row_tile, 1), jnp.float32),      # running max
            pltpu.VMEM((row_tile, 1), jnp.float32),      # running denominator
            pltpu.VMEM((row_tile, f_ext), jnp.float32),  # running numerator
        ],
        compiler_params=pltpu.CompilerParams(
            dimension_semantics=("parallel", "arbitrary"),
            vmem_limit_bytes=32 * 1024 * 1024),
        cost_estimate=pl.CostEstimate(
            flops=int(2 * n_pad * n_pad * f_ext + 8 * n_pad * n_pad),
            transcendentals=int(n_pad * n_pad),
            bytes_accessed=int(n_pad * n_pad * 1
                               + n_row * n_pad * f_ext * esize
                               + n_pad * f_ext * esize
                               + n_pad * f_ext * 4)),
    )(h_ext, a_src_t, h_ext, adj, bias_p)

    return out_p[:N, :F]


# -----------------------------------------------------------------------------
# Pure-JAX edge-list reference (mirrors PyG GATConv message passing)
# -----------------------------------------------------------------------------
def gat_reference(x, edge_index, params, compute_dtype=jnp.float32):
    """compute_dtype only emulates the kernel's MXU-operand rounding (bf16 path);
    all math is done in f32."""
    w, att_src, att_dst, bias = params
    N, _ = x.shape
    xc = x.astype(compute_dtype).astype(jnp.float32)
    wc = w.astype(compute_dtype).astype(jnp.float32)
    h = (xc @ wc).astype(compute_dtype).astype(jnp.float32)
    a_src = h @ att_src
    a_dst = h @ att_dst
    loops = jnp.arange(N)
    src = jnp.concatenate([edge_index[0], loops])
    dst = jnp.concatenate([edge_index[1], loops])
    e = a_src[src] + a_dst[dst]
    e = jnp.where(e > 0, e, NEG_SLOPE * e)
    e_max = jax.ops.segment_max(e, dst, num_segments=N)
    p = jnp.exp(e - e_max[dst])
    denom = jax.ops.segment_sum(p, dst, num_segments=N)
    alpha = p / denom[dst]
    out = jax.ops.segment_sum(alpha[:, None] * h[src], dst, num_segments=N)
    return out + bias[None, :]


# -----------------------------------------------------------------------------
# Test harness
# -----------------------------------------------------------------------------
def _make_case(n_nodes, feat, key):
    kx, kw, ks, kd = jax.random.split(key, 4)
    x = jax.random.normal(kx, (n_nodes, feat), dtype=jnp.float32)
    scale = 1.0 / jnp.sqrt(jnp.float32(feat))
    w = jax.random.normal(kw, (feat, feat), dtype=jnp.float32) * scale
    att_src = jax.random.normal(ks, (feat,), dtype=jnp.float32) * scale
    att_dst = jax.random.normal(kd, (feat,), dtype=jnp.float32) * scale
    bias = jnp.zeros((feat,), dtype=jnp.float32)
    # Deterministic duplicate-free edge list: ring + skip-3 connections (no self loops).
    idx = jnp.arange(n_nodes, dtype=jnp.int32)
    src = jnp.concatenate([idx, idx])
    dst = jnp.concatenate([(idx + 1) % n_nodes, (idx + 3) % n_nodes])
    edge_index = jnp.stack([src, dst]).astype(jnp.int32)
    return x, edge_index, (w, att_src, att_dst, bias)


def _run_case(n_nodes, feat, mxu_dtype, rtol, atol, key):
    x, edge_index, params = _make_case(n_nodes, feat, key)
    out = gat_feature_extractor(x, edge_index, params, mxu_dtype=mxu_dtype)
    out = jax.block_until_ready(out)
    ref = gat_reference(x, edge_index, params, compute_dtype=mxu_dtype)
    assert out.shape == (n_nodes, feat)
    assert bool(jnp.all(jnp.isfinite(out))), "non-finite output"
    assert jnp.allclose(out, ref, rtol=rtol, atol=atol), (
        f"mismatch vs reference (N={n_nodes}): "
        f"max abs err {float(jnp.max(jnp.abs(out - ref)))}")
    return out


if __name__ == "__main__":
    key = jax.random.PRNGKey(0)
    # 1) Small exact-semantics check (f32 MXU operands; tolerance slack only for the
    #    EUP approximate reciprocal used in the deferred softmax normalization).
    _run_case(16, 32, jnp.float32, rtol=1e-2, atol=1e-2, key=key)
    # 2) Multi-tile check: N padded to 1024 -> grid (4, 2); exercises the online
    #    softmax across adjacency column tiles and the bf16 MXU fast path
    #    (tolerance accounts for bf16 operand rounding).
    _run_case(640, 32, jnp.bfloat16, rtol=5e-2, atol=5e-2, key=key)
    print("KERNEL_OK")
</pallas_src>

<mosaic_0001>
module attributes {stable_mosaic.version = 11 : i64} {
  func.func @_proj_kernel(%arg0: i32, %arg1: memref<256x128xf32, #tpu.memory_space<vmem>>, %arg2: memref<128x128xf32, #tpu.memory_space<vmem>>, %arg3: memref<1x128xf32, #tpu.memory_space<vmem>>, %arg4: memref<256x128xf32, #tpu.memory_space<vmem>>, %arg5: memref<1x256xf32, #tpu.memory_space<vmem>>) attributes {dimension_semantics = [#tpu.dimension_semantics<parallel>], iteration_bounds = array<i64: 2>, scalar_prefetch = 0 : i64, scratch_operands = 0 : i64, tpu.core_type = #tpu.core_type<tc>, window_params = [{transform_indices = @transform_0, window_bounds = array<i64: 256, 128>}, {pipeline_mode = #tpu.pipeline_mode<synchronous>, transform_indices = @transform_1, window_bounds = array<i64: 128, 128>}, {pipeline_mode = #tpu.pipeline_mode<synchronous>, transform_indices = @transform_2, window_bounds = array<i64: 1, 128>}, {transform_indices = @transform_3, window_bounds = array<i64: 256, 128>}, {transform_indices = @transform_4, window_bounds = array<i64: 1, 256>}]} {
    %c0 = arith.constant 0 : index
    %c0_0 = arith.constant 0 : index
    %0 = vector.load %arg1[%c0, %c0_0] : memref<256x128xf32, #tpu.memory_space<vmem>>, vector<256x128xf32>
    %c0_1 = arith.constant 0 : index
    %c0_2 = arith.constant 0 : index
    %1 = vector.load %arg2[%c0_1, %c0_2] : memref<128x128xf32, #tpu.memory_space<vmem>>, vector<128x128xf32>
    %cst = arith.constant dense<0.000000e+00> : vector<256x128xf32>
    %2 = tpu.matmul %0, %1, %cst {dimension_numbers = #tpu.dot_dimension_numbers<[1], [0], [0], [1], [0, 0, 1, 1], [], []>} : vector<256x128xf32>, vector<128x128xf32>, vector<256x128xf32> -> vector<256x128xf32>
    %c0_3 = arith.constant 0 : index
    %c0_4 = arith.constant 0 : index
    %3 = vector.load %arg4[%c0_3, %c0_4] : memref<256x128xf32, #tpu.memory_space<vmem>>, vector<256x128xf32>
    tpu.vector_store %arg4[%c0_3, %c0_4], %2 {strides = array<i32>} : memref<256x128xf32, #tpu.memory_space<vmem>>, vector<256x128xf32>,
    %c0_5 = arith.constant 0 : index
    %c0_6 = arith.constant 0 : index
    %4 = vector.load %arg3[%c0_5, %c0_6] : memref<1x128xf32, #tpu.memory_space<vmem>>, vector<1x128xf32>
    %cst_7 = arith.constant dense<0.000000e+00> : vector<1x256xf32>
    %5 = tpu.matmul %4, %0, %cst_7 {dimension_numbers = #tpu.dot_dimension_numbers<[1], [1], [0], [0], [0, 0, 1, 0], [], []>} : vector<1x128xf32>, vector<256x128xf32>, vector<1x256xf32> -> vector<1x256xf32>
    %c0_8 = arith.constant 0 : index
    %c0_9 = arith.constant 0 : index
    %6 = vector.load %arg5[%c0_8, %c0_9] : memref<1x256xf32, #tpu.memory_space<vmem>>, vector<1x256xf32>
    tpu.vector_store %arg5[%c0_8, %c0_9], %5 {strides = array<i32>} : memref<1x256xf32, #tpu.memory_space<vmem>>, vector<1x256xf32>,
    return
  }
  func.func @transform_0(%arg0: i32) -> (i32, i32) {
    %c0_i32 = arith.constant 0 : i32
    %c0_i32_0 = arith.constant 0 : i32
    return %arg0, %c0_i32 : i32, i32
  }
  func.func @transform_1(%arg0: i32) -> (i32, i32) {
    %c0_i32 = arith.constant 0 : i32
    %c0_i32_0 = arith.constant 0 : i32
    %c0_i32_1 = arith.constant 0 : i32
    return %c0_i32, %c0_i32_0 : i32, i32
  }
  func.func @transform_2(%arg0: i32) -> (i32, i32) {
    %c0_i32 = arith.constant 0 : i32
    %c0_i32_0 = arith.constant 0 : i32
    %c0_i32_1 = arith.constant 0 : i32
    return %c0_i32, %c0_i32_0 : i32, i32
  }
  func.func @transform_3(%arg0: i32) -> (i32, i32) {
    %c0_i32 = arith.constant 0 : i32
    %c0_i32_0 = arith.constant 0 : i32
    return %arg0, %c0_i32 : i32, i32
  }
  func.func @transform_4(%arg0: i32) -> (i32, i32) {
    %c0_i32 = arith.constant 0 : i32
    %c0_i32_0 = arith.constant 0 : i32
    return %c0_i32, %arg0 : i32, i32
  }
}

</mosaic_0001>

<bundles_post_ra>
// kernel: tpu_custom_call.1
= control target key start
LH: loop header
LB: loop body
LE: loop exit
PB: predicated region body
PF: predicated region fallthrough
CT: control target
= control target key end

     0   :  { %10 = vsyncpa [#allocation3], 0  ;;  %s1582_s0 = inlined_call_operand.hbm [shape: f32[512,128], index: 0, kind: input, shape index: {}]   ;;  %s1583_s1 = inlined_call_operand.hbm [shape: f32[128,128], index: 1, kind: input, shape index: {}]   ;;  %s1584_s2 = inlined_call_operand.vmem [shape: f32[1,128], index: 2, kind: input, shape index: {}]   ;;  %s1585_s3 = inlined_call_operand.hbm [shape: f32[512,128], index: 3, kind: output, shape index: {0}]   ;;  %s1586_s4 = inlined_call_operand.hbm [shape: f32[1,512], index: 4, kind: output, shape index: {1}]  }
   0x1   :  { %12 = vsyncpa [#allocation3 + $0x1], 0 }
   0x2   :  { %13 = vsyncpa [#allocation6], 0 }
   0x3   :  { %14 = vsyncpa [#allocation4], 0 }
   0x4   :  { %16 = vsyncpa [#allocation4 + $0x1], 0 }
   0x5   :  { %17 = vsyncpa [#allocation9], 0 }
   0x6   :  { %19 = vsyncpa [#allocation9 + $0x1], 0  ;;  %s1233_s15 = smov 0   ;;  %s1235_s16 = smov 0  }
   0x7   :  { %s1237_s17 = smov 0   ;;  %s1239_s18 = smov 0  }
   0x8 LB: > { %s1254_s19 = sadd.s32 4294967295, %s1197_s18   ;;  %s793_s20 = sadd.s32 4294967294, %s1197_s18   ;;  %s1197_s18 = sphi %s1239_s18, %s1608_s18   ;;  %s1193_s17 = sphi %s1237_s17, %s1607_s17   ;;  %s1189_s16 = sphi %s1235_s16, %s1606_s16   ;;  %s1185_s15 = sphi %s1233_s15, %s1605_s15  }
   0x9   : > { %p45_p0 = scmp.ne.s32.totalorder %s1189_s16, %s1185_s15  ;;  %p1587_p1 = scmp.eq.s32.totalorder %s1254_s19, 0 }
   0xa   : > { %p117_p3 = scmp.eq.s32.totalorder %s793_s20, 1  ;;  %p794_p5 = scmp.ge.s32.totalorder %s1197_s18, 1 }
   0xb   : > { %p1263_p4 = por %p1587_p1, %p45_p0  ;;  %p150_p7 = scmp.lt.s32.totalorder %s1197_s18, 3 }
   0xc   : > { %p1268_p6 = por %p117_p3, %p45_p0  ;;  %s1199_s24 = smov [#allocation5]  }
   0xd   : > { %s1591_s21 = scalar_select %p1263_p4, 1, 0 }
   0xe   : > { %s1592_s22 = scalar_select %p1268_p6, 1, 0 }
   0xf   : > { %p1273_p8 = pnand %p794_p5, %p150_p7  ;;  %s162_s25 = sshll.u32 %s1199_s24, 4  ;;  %s163_s25 = int_to_ptr.vmem [resolvable:$true] %s162_s25 }
  0x10   : > { %s1287_s27 = sadd.s32 1, %s1197_s18   ;;  %s32_s28 = sadd.s32 1, %s1193_s17 }
  0x11   : > { %s1593_s23 = scalar_select %p1273_p8, 1, 0 }
  0x12   : > { %p988_p9 = pneg %p1273_p8  ;;  %s29_s29 = ssub.s32 %s1197_s18, %s1287_s27 }
  0x13   : > { %s1056_s30 = scalar_lea.vmem %s163_s25, 2048  ;;  %p1064_p5 = scmp.lt.s32.totalorder %s163_s25, %s163_s25 }
  0x14   : > { %p1282_p11 = pnand %p988_p9, %p1587_p1  ;;  %p1057_p13 = scmp.ne.s32.totalorder %s163_s25, %s1056_s30 }
  0x15   : > { %p1065_p7 = scmp.lt.s32.totalorder %s1056_s30, %s1056_s30 }
  0x16   : > { %p1047_p12 = pneg %p1282_p11 }
  0x17   : > { %p1066_p10 = por %p1065_p7, %p1064_p5 }
  0x18   : > { %p1059_p0 = pnand %p1057_p13, %p1047_p12 }
  0x1a   : > { %p1060_p3 = pneg %p1059_p0 }
  0x1c   : > { %p1067_p2 = pnand %p1066_p10, %p1060_p3 }
  0x1e   : > { %1070 = shalt.err (!%p1067_p2)
}
  0x1f   : > { %s1200_s5 = smov 128   ;;  %s1201_s6 = smov 8  }
  0x20   : > { %991 = dma.hbm_to_vmem [thread:$0]  (!%p1282_p11), %s1583_s1, 2048, %s163_s25, [#allocation6], %s1200_s5, %s1200_s5, %s1201_s6  }
  0x21   : > { %p30_p2 = scmp.eq.s32.totalorder %s29_s29, 0  ;;  %p39_p9 = scmp.ne.s32.totalorder %s1193_s17, %s1189_s16 }
  0x22   : > { %p40_p10 = scmp.eq.s32.totalorder %s1197_s18, 0  ;;  %p1004_p12 = scmp.lt.s32.totalorder %s1197_s18, 2 }
  0x23   : > { %s1307_s9 = scalar_select %p30_p2, %s1193_s17, %s32_s28  }
  0x24   : > { %p41_p13 = por %p40_p10, %p39_p9  ;;  %p1595_p0 = scmp.eq.s32.totalorder %s1254_s19, 1 }
  0x25   : > { %s179_s11 = sand.u32 1, %s1193_s17   ;;  %s813_s12 = sshll.u32 %s1197_s18, 12 }
  0x26   : > { %p1311_p3 = por %p1595_p0, %p39_p9  ;;  %s797_s13 = sshll.u32 %s179_s11, 8 }
  0x27   : > { %s1320_s24 = scalar_lea.hbm %s1582_s0, %s813_s12  ;;  %s183_s25 = scalar_lea.vmem [#allocation2], %s797_s13 }
  0x28   : > { %s1596_s10 = scalar_select %p1311_p3, 1, 0 }
  0x29   : > { %s190_s26 = sshll.u32 %s183_s25, 4  ;;  %p1322_p11 = pnand %p1004_p12, %p41_p13  ;;  %s1326_s26 = int_to_ptr.vmem [resolvable:$true] %s190_s26 }
  0x2a   : > { %s1328_s29 = scalar_lea.sflag [#allocation3], %s179_s11  ;;  %s1071_s30 = scalar_lea.hbm %s1320_s24, 4096 }
  0x2b   : > { %p1072_p5 = scmp.ne.s32.totalorder %s1320_s24, %s1071_s30  ;;  %p1073_p7 = pneg %p1322_p11 }
  0x2c   : > { %s1076_s12 = scalar_lea.hbm %s1582_s0, 8192  ;;  %p1077_p10 = scmp.lt.s32.totalorder %s1320_s24, %s1582_s0 }
  0x2d   : > { %p1074_p2 = pnand %p1073_p7, %p1072_p5  ;;  %p1078_p12 = scmp.lt.s32.totalorder %s1076_s12, %s1071_s30 }
  0x2f   : > { %p1075_p9 = pneg %p1074_p2  ;;  %p1079_p13 = por %p1078_p12, %p1077_p10 }
  0x31   : > { %p1080_p0 = pnand %p1079_p13, %p1075_p9 }
  0x33   : > { %1083 = shalt.err (!%p1080_p0)
}
  0x34   : > { %s1084_s11 = scalar_lea.vmem %s1326_s26, 4096  ;;  %s1202_s20 = smov [#allocation2]  }
  0x35   : > { %p1085_p1 = scmp.ne.s32.totalorder %s1326_s26, %s1084_s11  ;;  %s1089_s25 = sshll.u32 %s1202_s20, 4  ;;  %s1090_s25 = int_to_ptr.vmem [resolvable:$false] %s1089_s25 }
  0x36   : > { %s1091_s7 = scalar_lea.vmem %s1090_s25, 8192  ;;  %p1092_p2 = scmp.lt.s32.totalorder %s1326_s26, %s1090_s25 }
  0x37   : > { %p1087_p6 = pnand %p1085_p1, %p1073_p7  ;;  %p1093_p3 = scmp.lt.s32.totalorder %s1091_s7, %s1084_s11 }
  0x39   : > { %p1088_p5 = pneg %p1087_p6  ;;  %p1094_p4 = por %p1093_p3, %p1092_p2 }
  0x3b   : > { %p1095_p8 = pnand %p1094_p4, %p1088_p5 }
  0x3d   : > { %1098 = shalt.err (!%p1095_p8)
}
  0x3e   : > { %995 = dma.hbm_to_vmem [thread:$0]  (!%p1322_p11), %s1320_s24, 4096, %s1326_s26, %s1328_s29, %s1200_s5, %s1200_s5, %s1201_s6  }
  0x3f   : > { %p1598_p1 = scmp.ne.s32.totalorder %s1593_s23, 0 }
  0x40   : > { %s1355_s30 = sand.u32 (!%p1598_p1), 1, %s1189_s16   ;;  %p1599_p4 = scmp.ne.s32.totalorder (!%p1598_p1), %s1591_s21, 0 }
  0x41   : > { %202 = sbr.rel (%p1598_p1) target bundleno = 387 (0x183), region = 32  ;;  %s801_s8 = sshll.u32 (!%p1598_p1), %s1355_s30, 8 }
  0x42   : > { %s205_s12 = scalar_lea.sflag (!%p1598_p1), [#allocation3], %s1355_s30  ;;  %s1361_s28 = scalar_lea.vmem (!%p1598_p1), [#allocation2], %s801_s8 }
  0x46   : > { %1168 = dma.done.wait (%p1599_p4), %s205_s12, 4096  }
  0x47   : > { %1170 = vsyncadd (%p1599_p4), %s205_s12, 4294963200  ;;  %p1600_p6 = scmp.eq.s32.totalorder %s1254_s19, 0 }
  0x49   : > { %1172 = dma.done.wait (%p1600_p6), [#allocation6], 2048   ;;  %p1601_p8 = pmov %p1600_p6 }
  0x4a   : > { %v292_v0 = vld [vmem:[#allocation5 + $0x78] sm:$0xff]  ;;  %v291_v1 = vld [vmem:[#allocation5 + $0x70] sm:$0xff]  ;;  %v290_v2 = vld [vmem:[#allocation5 + $0x68] sm:$0xff]  ;;  %s1468_s5 = scalar_lea.vmem [#allocation7], %s801_s8  ;;  %s804_s6 = sshll.u32 %s1355_s30, 1 }
  0x4b   : > { %1174 = vsyncadd (%p1601_p8), [#allocation6], 4294965248  ;;  %898 = vmatprep.subr.mxu0 %v292_v0  ;;  %v1372_v3 = vld [vmem:[%s1361_s28 + $0xf8] sm:$0xff]  ;;  %v289_v4 = vld [vmem:[#allocation5 + $0x60] sm:$0xff]  ;;  %s815_s24 = sshll.u32 %s1254_s19, 5  ;;  %s241_s26 = scalar_lea.vmem [#allocation8], %s804_s6 }
  0x4c   : > { %899 = vmatpush3.msra.mxu0 %v292_v0  ;;  %864 = vmatprep.subr.mxu1 %v1372_v3  ;;  %v1376_v5 = vld [vmem:[%s1361_s28 + $0x78] sm:$0xff]  ;;  %v1380_v6 = vld [vmem:[%s1361_s28 + $0xf0] sm:$0xff]  ;;  %v1387_v9 = vld [vmem:[%s1361_s28 + $0xe8] sm:$0xff]  ;;  %v1203_v0 = vmov 1966171168   ;;  %s681_s29 = sshll.u32 %s241_s26, 4  ;;  %s1496_s11 = scalar_lea.hbm %s1586_s4, %s815_s24  ;;  %s1498_s29 = int_to_ptr.vmem [resolvable:$true] %s681_s29 }
  0x4d   : > { %900 = vmatprep.subr.mxu0 %v291_v1  ;;  %865 = vmatpush3.xpose.msra.mxu1 %v1376_v5  ;;  %v288_v7 = vld [vmem:[#allocation5 + $0x58] sm:$0xff]  ;;  %v1384_v8 = vld [vmem:[%s1361_s28 + $0x70] sm:$0xff]  ;;  %v1390_v10 = vld [vmem:[%s1361_s28] sm:$0xff]  ;;  %s651_s20 = scalar_lea.sflag [#allocation9], %s1355_s30  ;;  %s1099_s25 = scalar_lea.vmem %s1498_s29, 32 }
  0x4e   : > { %901 = vmatpush3.msra.mxu0 %v291_v1  ;;  %866 = vmatprep.subr.mxu1 %v1380_v6  ;;  %v287_v11 = vld [vmem:[#allocation5 + $0x50] sm:$0xff]  ;;  %v286_v12 = vld [vmem:[#allocation5 + $0x48] sm:$0xff]  ;;  %v1399_v14 = vld [vmem:[%s1361_s28 + $0xe0] sm:$0xff]  ;;  %v626_v1 = vunpack.c.l.s4 %v1203_v0  ;;  %p1100_p3 = scmp.ne.s32.totalorder %s1498_s29, %s1099_s25  ;;  %p1602_p11 = scmp.ne.s32.totalorder %s1596_s10, 0 }
  0x4f   : > { %902 = vmatprep.subr.mxu0 %v290_v2  ;;  %930 = vmatprep.mubr.f32.mxu0 %v1390_v10  ;;  %v1396_v13 = vld [vmem:[%s1361_s28 + $0x68] sm:$0xff]  ;;  %v285_v15 = vld [vmem:[#allocation5 + $0x40] sm:$0xff]  ;;  %v284_v16 = vld [vmem:[#allocation5 + $0x38] sm:$0xff]  ;;  %s1204_s7 = smov [#allocation8]  }
  0x50   : > { %903 = vmatpush3.msra.mxu0 %v290_v2  ;;  %v1404_v17 = vld [vmem:[%s1361_s28 + $0x60] sm:$0xff]  ;;  %v1407_v18 = vld [vmem:[%s1361_s28 + $0xd8] sm:$0xff]  ;;  %v283_v19 = vld [vmem:[#allocation5 + $0x30] sm:$0xff]  ;;  %v628_v2 = vlaneseq  ;;  %p1101_p7 = pnand %p1100_p3, %p1602_p11  ;;  %s1103_s8 = sshll.u32 %s1204_s7, 4  ;;  %s1104_s8 = int_to_ptr.vmem [resolvable:$false] %s1103_s8 }
  0x51   : > { %904 = vmatprep.subr.mxu0 %v289_v4  ;;  %867 = vmatpush3.xpose.msra.mxu1 %v1384_v8  ;;  %v1412_v20 = vld [vmem:[%s1584_s2] sm:$0x1]  ;;  %v282_v21 = vld [vmem:[#allocation5 + $0x28] sm:$0xff]  ;;  %v1417_v22 = vld [vmem:[%s1361_s28 + $0x58] sm:$0xff]  ;;  %s1105_s12 = scalar_lea.vmem %s1104_s8, 64  ;;  %p1106_p10 = scmp.lt.s32.totalorder %s1498_s29, %s1104_s8 }
  0x52   : > { %905 = vmatpush3.msra.mxu0 %v289_v4  ;;  %868 = vmatprep.subr.mxu1 %v1387_v9  ;;  %v1420_v23 = vld [vmem:[%s1361_s28 + $0xd0] sm:$0xff]  ;;  %v281_v24 = vld [vmem:[#allocation5 + $0x20] sm:$0xff]  ;;  %v280_v25 = vld [vmem:[#allocation5 + $0x18] sm:$0xff]  ;;  %vm642_vm0 = vcmp.lt.s32.totalorder %v628_v2, 256  ;;  %p1102_p9 = pneg %p1101_p7  ;;  %p1107_p12 = scmp.lt.s32.totalorder %s1105_s12, %s1099_s25 }
  0x53   : > { %906 = vmatprep.subr.mxu0 %v288_v7  ;;  %896 = vmatprep.mubr.f32.mxu1 %v1412_v20  ;;  %v255_v26 = vld [vmem:[%s1361_s28 + $0x50] sm:$0xff]  ;;  %v1427_v27 = vld [vmem:[%s1361_s28 + $0xc8] sm:$0xff]  ;;  %v1432_v31 = vld [vmem:[%s1361_s28 + $0xc0] sm:$0xff] }
  0x54   : > { %907 = vmatpush3.msra.mxu0 %v288_v7  ;;  %v279_v28 = vld [vmem:[#allocation5 + $0x10] sm:$0xff]  ;;  %v278_v29 = vld [vmem:[#allocation5 + $0x8] sm:$0xff]  ;;  %v277_v32 = vld [vmem:[#allocation5] sm:$0xff]  ;;  %p1108_p13 = por %p1107_p12, %p1106_p10 }
  0x55   : > { %908 = vmatprep.subr.mxu0 %v287_v11  ;;  %869 = vmatpush3.xpose.msra.mxu1 %v1396_v13  ;;  %v254_v30 = vld [vmem:[%s1361_s28 + $0x48] sm:$0xff]  ;;  %v247_v34 = vld [vmem:[%s1361_s28 + $0x10] sm:$0xff]  ;;  %v268_v35 = vld [vmem:[%s1361_s28 + $0xb8] sm:$0xff] }
  0x56   : > { %909 = vmatpush3.msra.mxu0 %v287_v11  ;;  %870 = vmatprep.subr.mxu1 %v1399_v14  ;;  %v246_v33 = vld [vmem:[%s1361_s28 + $0x8] sm:$0xff]  ;;  %v253_v36 = vld [vmem:[%s1361_s28 + $0x40] sm:$0xff]  ;;  %v248_v37 = vld [vmem:[%s1361_s28 + $0x18] sm:$0xff]  ;;  %p1109_p0 = pnand %p1108_p13, %p1102_p9 }
  0x57   : > { %910 = vmatprep.subr.mxu0 %v286_v12  ;;  %v249_v38 = vld [vmem:[%s1361_s28 + $0x20] sm:$0xff]  ;;  %v267_v39 = vld [vmem:[%s1361_s28 + $0xb0] sm:$0xff]  ;;  %v252_v40 = vld [vmem:[%s1361_s28 + $0x38] sm:$0xff] }
  0x58   : > { %911 = vmatpush3.msra.mxu0 %v286_v12  ;;  %v250_v41 = vld [vmem:[%s1361_s28 + $0x28] sm:$0xff]  ;;  %v251_v42 = vld [vmem:[%s1361_s28 + $0x30] sm:$0xff]  ;;  %v265_v44 = vld [vmem:[%s1361_s28 + $0xa0] sm:$0xff] }
  0x59   : > { %912 = vmatprep.subr.mxu0 %v285_v15  ;;  %871 = vmatpush3.xpose.msra.mxu1 %v1404_v17  ;;  %v266_v43 = vld [vmem:[%s1361_s28 + $0xa8] sm:$0xff]  ;;  %v264_v45 = vld [vmem:[%s1361_s28 + $0x98] sm:$0xff]  ;;  %v263_v46 = vld [vmem:[%s1361_s28 + $0x90] sm:$0xff] }
  0x5a   : > { %913 = vmatpush3.msra.mxu0 %v285_v15  ;;  %872 = vmatprep.subr.mxu1 %v1407_v18  ;;  %v262_v47 = vld [vmem:[%s1361_s28 + $0x88] sm:$0xff]  ;;  %v261_v48 = vld [vmem:[%s1361_s28 + $0x80] sm:$0xff] }
  0x5b   : > { %914 = vmatprep.subr.mxu0 %v284_v16 }
  0x5c   : > { %915 = vmatpush3.msra.mxu0 %v284_v16 }
  0x5d   : > { %916 = vmatprep.subr.mxu0 %v283_v19  ;;  %873 = vmatpush3.xpose.msra.mxu1 %v1417_v22 }
  0x5e   : > { %917 = vmatpush3.msra.mxu0 %v283_v19  ;;  %874 = vmatprep.subr.mxu1 %v1420_v23 }
  0x5f   : > { %918 = vmatprep.subr.mxu0 %v282_v21 }
  0x60   : > { %919 = vmatpush3.msra.mxu0 %v282_v21 }
  0x61   : > { %920 = vmatprep.subr.mxu0 %v281_v24  ;;  %875 = vmatpush3.xpose.msra.mxu1 %v255_v26 }
  0x62   : > { %921 = vmatpush3.msra.mxu0 %v281_v24  ;;  %876 = vmatprep.subr.mxu1 %v1427_v27 }
  0x63   : > { %922 = vmatprep.subr.mxu0 %v280_v25 }
  0x64   : > { %923 = vmatpush3.msra.mxu0 %v280_v25 }
  0x65   : > { %924 = vmatprep.subr.mxu0 %v279_v28  ;;  %877 = vmatpush3.xpose.msra.mxu1 %v254_v30 }
  0x66   : > { %925 = vmatpush3.msra.mxu0 %v279_v28  ;;  %878 = vmatprep.subr.mxu1 %v1432_v31 }
  0x67   : > { %926 = vmatprep.subr.mxu0 %v278_v29 }
  0x68   : > { %927 = vmatpush3.msra.mxu0 %v278_v29 }
  0x69   : > { %928 = vmatprep.subr.mxu0 %v277_v32  ;;  %879 = vmatpush3.xpose.msra.mxu1 %v253_v36 }
  0x6a   : > { %929 = vmatpush3.msra.mxu0 %v277_v32  ;;  %880 = vmatprep.subr.mxu1 %v268_v35 }
  0x6b   : > { %931 = vmatmul.mubr.f32.vlgmr.msra.gmra.mxu0 %v246_v33 }
  0x6c   : > { %933 = vmatprep.mubr.f32.mxu0 %v247_v34 }
  0x6d   : > { %881 = vmatpush3.xpose.msra.mxu1 %v252_v40 }
  0x6e   : > { %882 = vmatprep.subr.mxu1 %v267_v39 }
  0x6f   : > { %934 = vmatmul.mubr.f32.gmra.mxu0 %v248_v37 }
  0x70   : > { %936 = vmatprep.mubr.f32.mxu0 %v249_v38 }
  0x71   : > { %883 = vmatpush3.xpose.msra.mxu1 %v251_v42 }
  0x72   : > { %884 = vmatprep.subr.mxu1 %v266_v43 }
  0x73   : > { %937 = vmatmul.mubr.f32.gmra.mxu0 %v250_v41 }
  0x74   : > { %939 = vmatprep.mubr.f32.mxu0 %v251_v42 }
  0x75   : > { %885 = vmatpush3.xpose.msra.mxu1 %v250_v41 }
  0x76   : > { %886 = vmatprep.subr.mxu1 %v265_v44 }
  0x77   : > { %940 = vmatmul.mubr.f32.gmra.mxu0 %v252_v40 }
  0x78   : > { %942 = vmatprep.mubr.f32.mxu0 %v253_v36 }
  0x79   : > { %887 = vmatpush3.xpose.msra.mxu1 %v249_v38 }
  0x7a   : > { %888 = vmatprep.subr.mxu1 %v264_v45 }
  0x7b   : > { %943 = vmatmul.mubr.f32.gmra.mxu0 %v254_v30 }
  0x7c   : > { %945 = vmatprep.mubr.f32.mxu0 %v255_v26 }
  0x7d   : > { %889 = vmatpush3.xpose.msra.mxu1 %v248_v37 }
  0x7e   : > { %890 = vmatprep.subr.mxu1 %v263_v46 }
  0x7f   : > { %946 = vmatmul.mubr.f32.gmra.mxu0 %v1417_v22 }
  0x80   : > { %948 = vmatprep.mubr.f32.mxu0 %v1404_v17 }
  0x81   : > { %891 = vmatpush3.xpose.msra.mxu1 %v247_v34 }
  0x82   : > { %892 = vmatprep.subr.mxu1 %v262_v47 }
  0x83   : > { %949 = vmatmul.mubr.f32.gmra.mxu0 %v1396_v13 }
  0x84   : > { %951 = vmatprep.mubr.f32.mxu0 %v1384_v8 }
  0x85   : > { %893 = vmatpush3.xpose.msra.mxu1 %v246_v33 }
  0x86   : > { %894 = vmatprep.subr.mxu1 %v261_v48 }
  0x87   : > { %952 = vmatmul.mubr.f32.gmra.mxu0 %v1376_v5  ;;  %v627_v5 = vunpack.c.0.s8 %v626_v1 }
  0x88   : > { %954 = vmatprep.mubr.f32.mxu0 %v261_v48 }
  0x89   : > { %895 = vmatpush3.xpose.msra.mxu1 %v1390_v10 }
  0x8b   : > { %955 = vmatmul.mubr.f32.gmra.mxu0 %v262_v47 }
  0x8c   : > { %957 = vmatprep.mubr.f32.mxu0 %v263_v46  ;;  %897 = vmatmul.mubr.f32.vlgmr.msra.gmra.mxu1 %v1412_v20 }
  0x8f   : > { %958 = vmatmul.mubr.f32.gmra.mxu0 %v264_v45 }
  0x90   : > { %960 = vmatprep.mubr.f32.mxu0 %v265_v44 }
  0x93   : > { %961 = vmatmul.mubr.f32.gmra.mxu0 %v266_v43 }
  0x94   : > { %963 = vmatprep.mubr.f32.mxu0 %v267_v39 }
  0x97   : > { %964 = vmatmul.mubr.f32.gmra.mxu0 %v268_v35 }
  0x98   : > { %966 = vmatprep.mubr.f32.mxu0 %v1432_v31 }
  0x9b   : > { %967 = vmatmul.mubr.f32.gmra.mxu0 %v1427_v27 }
  0x9c   : > { %969 = vmatprep.mubr.f32.mxu0 %v1420_v23 }
  0x9f   : > { %970 = vmatmul.mubr.f32.gmra.mxu0 %v1407_v18 }
  0xa0   : > { %972 = vmatprep.mubr.f32.mxu0 %v1399_v14 }
  0xa3   : > { %973 = vmatmul.mubr.f32.gmra.mxu0 %v1387_v9 }
  0xa4   : > { %975 = vmatprep.mubr.f32.mxu0 %v1380_v6  ;;  %v629_v6 = vshrl.u32 %v628_v2, 7 }
  0xa6   : > { %v630_v10 = vsub.s32 %v627_v5, %v629_v6 }
  0xa7   : > { %976 = vmatmul.mubr.f32.gmra.mxu0 %v1372_v3 }
 0x12b   : > { %v932_v49 = vpop.f32.mrf.mxu0 }
 0x12c   : > { %519 = vst [vmem:[%s1468_s5 + $0x8] sm:$0xff] %v932_v49 }
 0x12d   : > { %v359_v50 = vpop.f32.mrf.mxu0 }
 0x12e   : > { %518 = vst [vmem:[%s1468_s5] sm:$0xff] %v359_v50 }
 0x12f   : > { %v935_v51 = vpop.f32.mrf.mxu0 }
 0x130   : > { %521 = vst [vmem:[%s1468_s5 + $0x18] sm:$0xff] %v935_v51 }
 0x131   : > { %v369_v52 = vpop.f32.mrf.mxu0 }
 0x132   : > { %520 = vst [vmem:[%s1468_s5 + $0x10] sm:$0xff] %v369_v52 }
 0x133   : > { %v938_v53 = vpop.f32.mrf.mxu0 }
 0x134   : > { %523 = vst [vmem:[%s1468_s5 + $0x28] sm:$0xff] %v938_v53 }
 0x135   : > { %v379_v54 = vpop.f32.mrf.mxu0 }
 0x136   : > { %522 = vst [vmem:[%s1468_s5 + $0x20] sm:$0xff] %v379_v54 }
 0x137   : > { %v941_v55 = vpop.f32.mrf.mxu0 }
 0x138   : > { %525 = vst [vmem:[%s1468_s5 + $0x38] sm:$0xff] %v941_v55 }
 0x139   : > { %v389_v56 = vpop.f32.mrf.mxu0 }
 0x13a   : > { %524 = vst [vmem:[%s1468_s5 + $0x30] sm:$0xff] %v389_v56 }
 0x13b   : > { %v944_v57 = vpop.f32.mrf.mxu0 }
 0x13c   : > { %527 = vst [vmem:[%s1468_s5 + $0x48] sm:$0xff] %v944_v57 }
 0x13d   : > { %v399_v58 = vpop.f32.mrf.mxu0 }
 0x13e   : > { %526 = vst [vmem:[%s1468_s5 + $0x40] sm:$0xff] %v399_v58 }
 0x13f   : > { %v947_v59 = vpop.f32.mrf.mxu0 }
 0x140   : > { %529 = vst [vmem:[%s1468_s5 + $0x58] sm:$0xff] %v947_v59 }
 0x141   : > { %v409_v60 = vpop.f32.mrf.mxu0 }
 0x142   : > { %528 = vst [vmem:[%s1468_s5 + $0x50] sm:$0xff] %v409_v60 }
 0x143   : > { %v950_v61 = vpop.f32.mrf.mxu0 }
 0x144   : > { %531 = vst [vmem:[%s1468_s5 + $0x68] sm:$0xff] %v950_v61 }
 0x145   : > { %v419_v62 = vpop.f32.mrf.mxu0 }
 0x146   : > { %530 = vst [vmem:[%s1468_s5 + $0x60] sm:$0xff] %v419_v62 }
 0x147   : > { %v953_v63 = vpop.f32.mrf.mxu0 }
 0x148   : > { %533 = vst [vmem:[%s1468_s5 + $0x78] sm:$0xff] %v953_v63 }
 0x149   : > { %v429_v3 = vpop.f32.mrf.mxu0 }
 0x14a   : > { %532 = vst [vmem:[%s1468_s5 + $0x70] sm:$0xff] %v429_v3 }
 0x14b   : > { %v956_v4 = vpop.f32.mrf.mxu0 }
 0x14c   : > { %535 = vst [vmem:[%s1468_s5 + $0x88] sm:$0xff] %v956_v4  ;;  %v617_v8 = vpop.f32.mrf.mxu1 }
 0x14d   : > { %v439_v7 = vpop.f32.mrf.mxu0 }
 0x14e   : > { %534 = vst [vmem:[%s1468_s5 + $0x80] sm:$0xff] %v439_v7  ;;  %v619_v11 = vpop.f32.mrf.mxu1 }
 0x14f   : > { %v959_v9 = vpop.f32.mrf.mxu0  ;;  %v624_v13 = vcombine.low %v617_v8, %v619_v11 }
 0x150   : > { %537 = vst [vmem:[%s1468_s5 + $0x98] sm:$0xff] %v959_v9 }
 0x151   : > { %v449_v12 = vpop.f32.mrf.mxu0  ;;  %v631_v15 = vrot.slane %v624_v13, %v630_v10 }
 0x152   : > { %536 = vst [vmem:[%s1468_s5 + $0x90] sm:$0xff] %v449_v12 }
 0x153   : > { %v962_v14 = vpop.f32.mrf.mxu0  ;;  %v638_v17 = vrot.slane %v631_v15, %v630_v10 }
 0x154   : > { %539 = vst [vmem:[%s1468_s5 + $0xa8] sm:$0xff] %v962_v14 }
 0x155   : > { %v459_v16 = vpop.f32.mrf.mxu0  ;;  %644 = vst.msk [vmem:[%s241_s26] sm:$0x3] %vm642_vm0, %v638_v17 }
 0x156   : > { %538 = vst [vmem:[%s1468_s5 + $0xa0] sm:$0xff] %v459_v16 }
 0x157   : > { %v965_v18 = vpop.f32.mrf.mxu0 }
 0x158   : > { %541 = vst [vmem:[%s1468_s5 + $0xb8] sm:$0xff] %v965_v18 }
 0x159   : > { %1112 = shalt.err (!%p1109_p0)
}
 0x15a   : > { %s1113_s28 = scalar_lea.hbm %s1496_s11, 32  ;;  %s1117_s6 = scalar_lea.hbm %s1586_s4, 64 }
 0x15b   : > { %p1114_p5 = scmp.ne.s32.totalorder %s1496_s11, %s1113_s28  ;;  %p1118_p4 = scmp.lt.s32.totalorder %s1496_s11, %s1586_s4 }
 0x15c   : > { %p1119_p6 = scmp.lt.s32.totalorder %s1117_s6, %s1113_s28 }
 0x15d   : > { %p1115_p2 = pnand %p1114_p5, %p1602_p11 }
 0x15e   : > { %p1120_p8 = por %p1119_p6, %p1118_p4 }
 0x15f   : > { %p1116_p1 = pneg %p1115_p2 }
 0x161   : > { %p1121_p3 = pnand %p1120_p8, %p1116_p1 }
 0x163   : > { %1124 = shalt.err (!%p1121_p3)
}
 0x164   : > { %985 = dma.vmem_to_hbm [thread:$0]  (%p1602_p11), %s1498_s29, 32, %s1496_s11, %s651_s20   ;;  %v469_v19 = vpop.f32.mrf.mxu0 }
 0x165   : > { %540 = vst [vmem:[%s1468_s5 + $0xb0] sm:$0xff] %v469_v19  ;;  %s814_s13 = sshll.u32 %s1254_s19, 12  ;;  %s664_s14 = sshll.u32 %s1468_s5, 4  ;;  %s1537_s14 = int_to_ptr.vmem [resolvable:$true] %s664_s14 }
 0x166   : > { %v968_v20 = vpop.f32.mrf.mxu0  ;;  %s1535_s20 = scalar_lea.hbm %s1585_s3, %s814_s13  ;;  %s646_s25 = scalar_lea.sflag [#allocation4], %s1355_s30 }
 0x167   : > { %543 = vst [vmem:[%s1468_s5 + $0xc8] sm:$0xff] %v968_v20  ;;  %s1125_s7 = scalar_lea.vmem %s1537_s14, 4096  ;;  %s1205_s19 = smov [#allocation7]  }
 0x168   : > { %v479_v21 = vpop.f32.mrf.mxu0  ;;  %p1126_p7 = scmp.ne.s32.totalorder %s1537_s14, %s1125_s7  ;;  %s1129_s8 = sshll.u32 %s1205_s19, 4  ;;  %s1130_s8 = int_to_ptr.vmem [resolvable:$false] %s1129_s8 }
 0x169   : > { %542 = vst [vmem:[%s1468_s5 + $0xc0] sm:$0xff] %v479_v21  ;;  %s1131_s12 = scalar_lea.vmem %s1130_s8, 8192  ;;  %p1132_p12 = scmp.lt.s32.totalorder %s1537_s14, %s1130_s8 }
 0x16a   : > { %v971_v22 = vpop.f32.mrf.mxu0  ;;  %p1127_p9 = pnand %p1126_p7, %p1602_p11  ;;  %p1133_p13 = scmp.lt.s32.totalorder %s1131_s12, %s1125_s7 }
 0x16b   : > { %545 = vst [vmem:[%s1468_s5 + $0xd8] sm:$0xff] %v971_v22 }
 0x16c   : > { %v489_v23 = vpop.f32.mrf.mxu0  ;;  %p1128_p10 = pneg %p1127_p9  ;;  %p1134_p0 = por %p1133_p13, %p1132_p12 }
 0x16d   : > { %544 = vst [vmem:[%s1468_s5 + $0xd0] sm:$0xff] %v489_v23 }
 0x16e   : > { %v974_v24 = vpop.f32.mrf.mxu0  ;;  %p1135_p5 = pnand %p1134_p0, %p1128_p10 }
 0x16f   : > { %547 = vst [vmem:[%s1468_s5 + $0xe8] sm:$0xff] %v974_v24 }
 0x170   : > { %v499_v25 = vpop.f32.mrf.mxu0 }
 0x171   : > { %546 = vst [vmem:[%s1468_s5 + $0xe0] sm:$0xff] %v499_v25 }
 0x172   : > { %v977_v26 = vpop.f32.mrf.mxu0 }
 0x173   : > { %549 = vst [vmem:[%s1468_s5 + $0xf8] sm:$0xff] %v977_v26 }
 0x174   : > { %v509_v27 = vpop.f32.mrf.mxu0 }
 0x175   : > { %548 = vst [vmem:[%s1468_s5 + $0xf0] sm:$0xff] %v509_v27 }
 0x176   : > { %1138 = shalt.err (!%p1135_p5)
}
 0x177   : > { %s1139_s5 = scalar_lea.hbm %s1535_s20, 4096  ;;  %s1143_s23 = scalar_lea.hbm %s1585_s3, 8192 }
 0x178   : > { %p1140_p2 = scmp.ne.s32.totalorder %s1535_s20, %s1139_s5  ;;  %p1144_p6 = scmp.lt.s32.totalorder %s1535_s20, %s1585_s3 }
 0x179   : > { %p1145_p8 = scmp.lt.s32.totalorder %s1143_s23, %s1139_s5 }
 0x17a   : > { %p1141_p1 = pnand %p1140_p2, %p1602_p11 }
 0x17b   : > { %p1146_p3 = por %p1145_p8, %p1144_p6 }
 0x17c   : > { %p1142_p4 = pneg %p1141_p1 }
 0x17e   : > { %p1147_p7 = pnand %p1146_p3, %p1142_p4 }
 0x180   : > { %1150 = shalt.err (!%p1147_p7)
}
 0x181   : > { %s1206_s26 = smov 128   ;;  %s1207_s13 = smov 8  }
 0x182   : > { %984 = dma.vmem_to_hbm [thread:$0]  (%p1602_p11), %s1537_s14, 4096, %s1535_s20, %s646_s25, %s1206_s26, %s1206_s26, %s1207_s13  }
 0x183 PF: > { %s693_s29 = sand.u32 1, %s1185_s15   ;;  %p1603_p9 = scmp.ne.s32.totalorder %s1592_s22, 0 }
 0x184   : > { %p1604_p10 = scmp.ge.s32.totalorder %s1197_s18, 2  ;;  %s694_s11 = scalar_lea.sflag [#allocation4], %s693_s29 }
 0x186   : > { %p997_p12 = pnand %p1604_p10, %p1603_p9 }
 0x188   : > { %p998_p13 = pneg %p997_p12 }
 0x18a   : > { %1176 = dma.done.wait (%p998_p13), %s694_s11, 4096  }
 0x18b   : > { %1178 = vsyncadd (%p998_p13), %s694_s11, 4294963200  ;;  %s703_s7 = scalar_lea.sflag [#allocation9], %s693_s29 }
 0x18c   : > { %1180 = dma.done.wait (%p998_p13), %s703_s7, 32  }
 0x18d   : > { %1182 = vsyncadd (%p998_p13), %s703_s7, 4294967264  ;;  %p22_p11 = scmp.ge.s32.totalorder %s1287_s27, 4   ;;  %s1605_s15 = smov %s1189_s16 }
 0x18e   : > { %s1606_s16 = smov %s1193_s17  ;;  %s1607_s17 = smov %s1307_s9 }
 0x18f   : > { %s1608_s18 = smov %s1287_s27  ;;  %24 = sbr.rel (!%p22_p11) target bundleno = 8 (0x8), region = 98 }
 0x194   :  { %708 = vsyncpa [#allocation3], 1 }
 0x195   :  { %710 = vsyncpa [#allocation3 + $0x1], 1 }
 0x196   :  { %711 = vsyncpa [#allocation6], 1 }
 0x197   :  { %712 = vsyncpa [#allocation4], 1 }
 0x198   :  { %714 = vsyncpa [#allocation4 + $0x1], 1 }
 0x199   :  { %715 = vsyncpa [#allocation9], 1 }
 0x19a   :  { %717 = vsyncpa [#allocation9 + $0x1], 1 }

</bundles_post_ra>
